<compile_context>
chip_gen: v6e
topology: v6e:2x2x1
jax: 0.10.0
libtpu: 0.0.40
codegen_flags: <defaults>
</compile_context>

<pallas_src>
import functools

import jax
import jax.numpy as jnp
from jax.experimental import pallas as pl
from jax.experimental.pallas import tpu as pltpu


def _round_up(x, m):
    return ((x + m - 1) // m) * m


def _sublane_multiple(dtype):
    itemsize = jnp.dtype(dtype).itemsize
    return {4: 8, 2: 16, 1: 32}.get(itemsize, 8)


_INV_SQRT2 = 0.7071067811865476
_SQRT_2_OVER_PI = 0.7978845608028654


def _gelu(h, approximate):
    if approximate:
        # tanh approximation -> transcendental goes to the EUP slot.
        return 0.5 * h * (1.0 + jnp.tanh(_SQRT_2_OVER_PI * (h + 0.044715 * h * h * h)))
    # Exact erf GELU (torch.nn.GELU default).
    return 0.5 * h * (1.0 + jax.lax.erf(h * _INV_SQRT2))


# ----------------------------------------------------------------------------
# Kernels
# ----------------------------------------------------------------------------
def _mlp_kernel_single(x_ref, w1_ref, b1_ref, w2_ref, b2_ref, o_ref, *,
                       approximate):
    # Full hidden dim in one shot; W1/W2 have constant index_maps so they are
    # resident in VMEM (fetched once for the whole grid).  No scratch needed.
    x = x_ref[...].astype(w1_ref.dtype)
    h = jnp.dot(x, w1_ref[...], preferred_element_type=jnp.float32)
    h = h + b1_ref[...].astype(jnp.float32)
    h = _gelu(h, approximate)
    y = jnp.dot(h.astype(w2_ref.dtype), w2_ref[...],
                preferred_element_type=jnp.float32)
    o_ref[...] = (y + b2_ref[...].astype(jnp.float32)).astype(o_ref.dtype)


def _mlp_kernel_multi(x_ref, w1_ref, b1_ref, w2_ref, b2_ref, o_ref, acc_ref, *,
                      approximate):
    # Hidden dim tiled along the second ("arbitrary") grid axis; (tm, Dout)
    # f32 accumulator carried across k in VMEM scratch.
    k = pl.program_id(1)

    @pl.when(k == 0)
    def _init():
        acc_ref[...] = jnp.zeros_like(acc_ref)

    x = x_ref[...].astype(w1_ref.dtype)
    h = jnp.dot(x, w1_ref[...], preferred_element_type=jnp.float32)
    h = h + b1_ref[...].astype(jnp.float32)
    h = _gelu(h, approximate)
    acc_ref[...] += jnp.dot(h.astype(w2_ref.dtype), w2_ref[...],
                            preferred_element_type=jnp.float32)

    @pl.when(k == pl.num_programs(1) - 1)
    def _finalize():
        o_ref[...] = (acc_ref[...] + b2_ref[...].astype(jnp.float32)
                      ).astype(o_ref.dtype)


# ----------------------------------------------------------------------------
# VMEM budgeting / tile selection
# ----------------------------------------------------------------------------
def _vmem_budget_bytes():
    cap = 64 << 20  # conservative fallback (v7x physical per-TC VMEM)
    try:
        info = pltpu.get_tpu_info()
        cap = int(getattr(info, "vmem_capacity_bytes", cap))
    except Exception:
        pass
    # Leave headroom for Mosaic internal scratch / pipelining.
    return max(cap - (8 << 20), 32 << 20)


def _vmem_estimate_bytes(tm, D, th, Dout, x_dt, w_dt, out_dt, multi_k):
    nb = lambda n, dt: n * jnp.dtype(dt).itemsize
    blocks = (nb(tm * D, x_dt) + nb(D * th, w_dt) + nb(th, w_dt)
              + nb(th * Dout, w_dt) + nb(Dout, w_dt) + nb(tm * Dout, out_dt))
    est = 2 * blocks                                   # double-buffered blocks
    est += tm * th * 4                                 # f32 GELU intermediate
    est += tm * th * jnp.dtype(w_dt).itemsize          # cast temp before fc2
    if multi_k:
        est += tm * Dout * 4                           # f32 accumulator scratch
    return est


def _select_th(th_request, H, tm, D, Dout, x_dt, w_dt, out_dt, budget):
    H128 = _round_up(H, 128)
    if th_request is not None:
        th = min(th_request, H128)
        return max(128, (th // 128) * 128)
    # Auto: prefer full H (resident weights, no k loop), then step down.
    candidates = [H128] + [c for c in (4096, 2048, 1024, 512, 256, 128)
                           if c < H128]
    for th in candidates:
        multi_k = _round_up(H128, th) // th > 1
        if _vmem_estimate_bytes(tm, D, th, Dout, x_dt, w_dt, out_dt,
                                multi_k) <= budget:
            return th
    return 128


# ----------------------------------------------------------------------------
# Wrapper
# ----------------------------------------------------------------------------
def mlp_pallas(x, w1, b1, w2, b2, *, tm=512, th=None, approximate_gelu=False):
    """x: (B, N, D).  w1: (D, H), b1: (H,), w2: (H, Dout), b2: (Dout,).

    Weights are stored transposed relative to torch.nn.Linear so the kernel
    computes x @ W + b directly.  Returns (B, N, Dout).
    """
    B, N, D = x.shape
    Dw, H = w1.shape
    assert Dw == D
    Hw, Dout = w2.shape
    assert Hw == H
    assert b1.shape == (H,) and b2.shape == (Dout,)

    M = B * N
    x2 = x.reshape(M, D)

    # Row tile: MXU-aligned, clamped for small problems, packed-sublane aligned.
    sub = _sublane_multiple(x.dtype)
    tm_eff = min(tm, _round_up(M, sub))
    tm_eff = max(sub, (tm_eff // sub) * sub)
    Mp = _round_up(M, tm_eff)

    budget = _vmem_budget_bytes()
    th_eff = _select_th(th, H, tm_eff, D, Dout, x2.dtype, w1.dtype, x.dtype,
                        budget)
    Hp = _round_up(H, th_eff)
    k_steps = Hp // th_eff

    # Zero-padding: padded rows are sliced off; padded hidden columns give
    # h = GELU(0) = 0 and hit zero rows of W2, contributing exactly 0.
    if Mp != M:
        x2 = jnp.pad(x2, ((0, Mp - M), (0, 0)))
    # TODO(synk): pad W1/b1/W2 once at parameter-preparation time (not per call)
    # when the hidden dim is not a multiple of 128.
    if Hp != H:
        w1 = jnp.pad(w1, ((0, 0), (0, Hp - H)))
        b1 = jnp.pad(b1, (0, Hp - H))
        w2 = jnp.pad(w2, ((0, Hp - H), (0, 0)))

    b1_2 = b1.reshape(1, Hp)
    b2_2 = b2.reshape(1, Dout)

    est = _vmem_estimate_bytes(tm_eff, D, th_eff, Dout, x2.dtype, w1.dtype,
                               x.dtype, multi_k=(k_steps > 1))
    vmem_limit = int(min(max(1.25 * est + (4 << 20), 32 << 20), budget))

    out_itemsize = jnp.dtype(x.dtype).itemsize
    cost = pl.CostEstimate(
        flops=int(2 * Mp * Hp * (D + Dout)),
        transcendentals=int(Mp * Hp),
        bytes_accessed=int(x2.size * x2.dtype.itemsize
                           + w1.size * w1.dtype.itemsize
                           + b1.size * b1.dtype.itemsize
                           + w2.size * w2.dtype.itemsize
                           + b2.size * b2.dtype.itemsize
                           + Mp * Dout * out_itemsize))

    if k_steps == 1:
        # Single-pass: weights resident in VMEM (constant index_map -> one DMA
        # for the whole grid), no accumulator scratch, direct store.
        kernel = functools.partial(_mlp_kernel_single,
                                   approximate=approximate_gelu)
        grid_spec = pltpu.PrefetchScalarGridSpec(
            num_scalar_prefetch=0,
            grid=(Mp // tm_eff,),
            in_specs=[
                pl.BlockSpec((tm_eff, D), lambda i: (i, 0)),     # x tile
                pl.BlockSpec((D, Hp), lambda i: (0, 0)),         # W1 (resident)
                pl.BlockSpec((1, Hp), lambda i: (0, 0)),         # b1
                pl.BlockSpec((Hp, Dout), lambda i: (0, 0)),      # W2 (resident)
                pl.BlockSpec((1, Dout), lambda i: (0, 0)),       # b2
            ],
            out_specs=pl.BlockSpec((tm_eff, Dout), lambda i: (i, 0)),
        )
        dim_sem = ("parallel",)
    else:
        # Hidden-tiled path for large H / tight VMEM.
        kernel = functools.partial(_mlp_kernel_multi,
                                   approximate=approximate_gelu)
        grid_spec = pltpu.PrefetchScalarGridSpec(
            num_scalar_prefetch=0,
            grid=(Mp // tm_eff, k_steps),
            in_specs=[
                pl.BlockSpec((tm_eff, D), lambda i, k: (i, 0)),      # x tile
                pl.BlockSpec((D, th_eff), lambda i, k: (0, k)),      # W1 chunk
                pl.BlockSpec((1, th_eff), lambda i, k: (0, k)),      # b1 chunk
                pl.BlockSpec((th_eff, Dout), lambda i, k: (k, 0)),   # W2 chunk
                pl.BlockSpec((1, Dout), lambda i, k: (0, 0)),        # b2
            ],
            out_specs=pl.BlockSpec((tm_eff, Dout), lambda i, k: (i, 0)),
            scratch_shapes=[pltpu.VMEM((tm_eff, Dout), jnp.float32)],
        )
        dim_sem = ("parallel", "arbitrary")

    out = pl.pallas_call(
        kernel,
        out_shape=jax.ShapeDtypeStruct((Mp, Dout), x.dtype),
        grid_spec=grid_spec,
        compiler_params=pltpu.CompilerParams(
            dimension_semantics=dim_sem,
            vmem_limit_bytes=vmem_limit),
        cost_estimate=cost,
    )(x2, w1, b1_2, w2, b2_2)

    return out[:M].reshape(B, N, Dout)


# ----------------------------------------------------------------------------
# Reference + test harness
# ----------------------------------------------------------------------------
def mlp_reference(x, w1, b1, w2, b2, *, approximate=False):
    h = jnp.einsum("bnd,dh->bnh", x.astype(jnp.float32),
                   w1.astype(jnp.float32)) + b1.astype(jnp.float32)
    h = _gelu(h, approximate)
    y = jnp.einsum("bnh,ho->bno", h, w2.astype(jnp.float32)) \
        + b2.astype(jnp.float32)
    return y.astype(x.dtype)


def _make_params(key, d_in, d_hid, d_out, dtype):
    k1, k2, k3, k4 = jax.random.split(key, 4)
    w1 = (jax.random.normal(k1, (d_in, d_hid), jnp.float32)
          * (1.0 / jnp.sqrt(d_in))).astype(dtype)
    b1 = (jax.random.normal(k2, (d_hid,), jnp.float32) * 0.02).astype(dtype)
    w2 = (jax.random.normal(k3, (d_hid, d_out), jnp.float32)
          * (1.0 / jnp.sqrt(d_hid))).astype(dtype)
    b2 = (jax.random.normal(k4, (d_out,), jnp.float32) * 0.02).astype(dtype)
    return w1, b1, w2, b2


if __name__ == "__main__":
    key = jax.random.PRNGKey(0)
    k_a, k_b, k_c, k_pa, k_pb, k_pc = jax.random.split(key, 6)

    # Test 1: aligned dims.  (a) auto th -> single-pass resident-weight path,
    # (b) forced th=256 -> hidden-tiled accumulator path,
    # (c) gated tanh-approx GELU path.
    B, N, Din, Hf, Dout = 2, 8, 128, 512, 128
    x = jax.random.normal(k_a, (B, N, Din), dtype=jnp.float32)
    w1, b1, w2, b2 = _make_params(k_pa, Din, Hf, Dout, jnp.float32)
    y_ref = mlp_reference(x, w1, b1, w2, b2)

    y = jax.block_until_ready(mlp_pallas(x, w1, b1, w2, b2))
    assert y.shape == (B, N, Dout)
    assert jnp.allclose(y, y_ref, atol=2e-3, rtol=2e-3), "mismatch (test 1a)"

    y = jax.block_until_ready(mlp_pallas(x, w1, b1, w2, b2, th=256))
    assert jnp.allclose(y, y_ref, atol=2e-3, rtol=2e-3), "mismatch (test 1b)"

    y = jax.block_until_ready(
        mlp_pallas(x, w1, b1, w2, b2, approximate_gelu=True))
    y_ref_tanh = mlp_reference(x, w1, b1, w2, b2, approximate=True)
    assert jnp.allclose(y, y_ref_tanh, atol=2e-3, rtol=2e-3), \
        "mismatch (test 1c)"

    # Test 2: ragged M and non-128-multiple hidden dim (padding path).
    B2, N2, Din2, Hf2, Dout2 = 1, 5, 128, 200, 128
    x2 = jax.random.normal(k_b, (B2, N2, Din2), dtype=jnp.float32)
    w1b, b1b, w2b, b2b = _make_params(k_pb, Din2, Hf2, Dout2, jnp.float32)
    y2 = jax.block_until_ready(mlp_pallas(x2, w1b, b1b, w2b, b2b))
    y2_ref = mlp_reference(x2, w1b, b1b, w2b, b2b)
    assert y2.shape == (B2, N2, Dout2)
    assert jnp.allclose(y2, y2_ref, atol=2e-3, rtol=2e-3), "mismatch (test 2)"

    # Test 3: bf16 weights/activations (bf16 MXU path, f32 accumulation).
    B3, N3, Din3, Hf3, Dout3 = 2, 8, 128, 512, 128
    x3 = jax.random.normal(k_c, (B3, N3, Din3), dtype=jnp.bfloat16)
    w1c, b1c, w2c, b2c = _make_params(k_pc, Din3, Hf3, Dout3, jnp.bfloat16)
    y3 = jax.block_until_ready(mlp_pallas(x3, w1c, b1c, w2c, b2c))
    y3_ref = mlp_reference(x3, w1c, b1c, w2c, b2c)
    assert jnp.allclose(y3.astype(jnp.float32), y3_ref.astype(jnp.float32),
                        atol=3e-2, rtol=3e-2), "mismatch (test 3)"

    print("KERNEL_OK")
</pallas_src>

<mosaic_0001>
module attributes {stable_mosaic.version = 11 : i64} {
  func.func @_mlp_kernel_single(%arg0: i32, %arg1: memref<16x128xf32, #tpu.memory_space<vmem>>, %arg2: memref<128x512xf32, #tpu.memory_space<vmem>>, %arg3: memref<1x512xf32, #tpu.memory_space<vmem>>, %arg4: memref<512x128xf32, #tpu.memory_space<vmem>>, %arg5: memref<1x128xf32, #tpu.memory_space<vmem>>, %arg6: memref<16x128xf32, #tpu.memory_space<vmem>>) attributes {dimension_semantics = [#tpu.dimension_semantics<parallel>], iteration_bounds = array<i64: 1>, scalar_prefetch = 0 : i64, scratch_operands = 0 : i64, tpu.core_type = #tpu.core_type<tc>, window_params = [{transform_indices = @transform_0, window_bounds = array<i64: 16, 128>}, {pipeline_mode = #tpu.pipeline_mode<synchronous>, transform_indices = @transform_1, window_bounds = array<i64: 128, 512>}, {pipeline_mode = #tpu.pipeline_mode<synchronous>, transform_indices = @transform_2, window_bounds = array<i64: 1, 512>}, {pipeline_mode = #tpu.pipeline_mode<synchronous>, transform_indices = @transform_3, window_bounds = array<i64: 512, 128>}, {pipeline_mode = #tpu.pipeline_mode<synchronous>, transform_indices = @transform_4, window_bounds = array<i64: 1, 128>}, {transform_indices = @transform_5, window_bounds = array<i64: 16, 128>}]} {
    %c0 = arith.constant 0 : index
    %c0_0 = arith.constant 0 : index
    %0 = vector.load %arg1[%c0, %c0_0] : memref<16x128xf32, #tpu.memory_space<vmem>>, vector<16x128xf32>
    %c0_1 = arith.constant 0 : index
    %c0_2 = arith.constant 0 : index
    %1 = vector.load %arg2[%c0_1, %c0_2] : memref<128x512xf32, #tpu.memory_space<vmem>>, vector<128x512xf32>
    %cst = arith.constant dense<0.000000e+00> : vector<16x512xf32>
    %2 = tpu.matmul %0, %1, %cst {dimension_numbers = #tpu.dot_dimension_numbers<[1], [0], [0], [1], [0, 0, 1, 1], [], []>} : vector<16x128xf32>, vector<128x512xf32>, vector<16x512xf32> -> vector<16x512xf32>
    %c0_3 = arith.constant 0 : index
    %c0_4 = arith.constant 0 : index
    %3 = vector.load %arg3[%c0_3, %c0_4] : memref<1x512xf32, #tpu.memory_space<vmem>>, vector<1x512xf32>
    %4 = vector.broadcast %3 : vector<1x512xf32> to vector<16x512xf32>
    %5 = arith.addf %2, %4 : vector<16x512xf32>
    %cst_5 = arith.constant 5.000000e-01 : f32
    %6 = vector.broadcast %cst_5 : f32 to vector<16x512xf32>
    %7 = arith.mulf %6, %5 : vector<16x512xf32>
    %cst_6 = arith.constant 0.707106769 : f32
    %8 = vector.broadcast %cst_6 : f32 to vector<16x512xf32>
    %9 = arith.mulf %5, %8 : vector<16x512xf32>
    %10 = math.erf %9 : vector<16x512xf32>
    %cst_7 = arith.constant 1.000000e+00 : f32
    %11 = vector.broadcast %cst_7 : f32 to vector<16x512xf32>
    %12 = arith.addf %11, %10 : vector<16x512xf32>
    %13 = arith.mulf %7, %12 : vector<16x512xf32>
    %c0_8 = arith.constant 0 : index
    %c0_9 = arith.constant 0 : index
    %14 = vector.load %arg4[%c0_8, %c0_9] : memref<512x128xf32, #tpu.memory_space<vmem>>, vector<512x128xf32>
    %cst_10 = arith.constant dense<0.000000e+00> : vector<16x128xf32>
    %15 = tpu.matmul %13, %14, %cst_10 {dimension_numbers = #tpu.dot_dimension_numbers<[1], [0], [0], [1], [0, 0, 1, 1], [], []>} : vector<16x512xf32>, vector<512x128xf32>, vector<16x128xf32> -> vector<16x128xf32>
    %c0_11 = arith.constant 0 : index
    %c0_12 = arith.constant 0 : index
    %16 = vector.load %arg5[%c0_11, %c0_12] : memref<1x128xf32, #tpu.memory_space<vmem>>, vector<1x128xf32>
    %17 = vector.broadcast %16 : vector<1x128xf32> to vector<16x128xf32>
    %18 = arith.addf %15, %17 : vector<16x128xf32>
    %c0_13 = arith.constant 0 : index
    %c0_14 = arith.constant 0 : index
    %19 = vector.load %arg6[%c0_13, %c0_14] : memref<16x128xf32, #tpu.memory_space<vmem>>, vector<16x128xf32>
    tpu.vector_store %arg6[%c0_13, %c0_14], %18 {strides = array<i32>} : memref<16x128xf32, #tpu.memory_space<vmem>>, vector<16x128xf32>,
    return
  }
  func.func @transform_0(%arg0: i32) -> (i32, i32) {
    %c0_i32 = arith.constant 0 : i32
    %c0_i32_0 = arith.constant 0 : i32
    return %arg0, %c0_i32 : i32, i32
  }
  func.func @transform_1(%arg0: i32) -> (i32, i32) {
    %c0_i32 = arith.constant 0 : i32
    %c0_i32_0 = arith.constant 0 : i32
    %c0_i32_1 = arith.constant 0 : i32
    return %c0_i32, %c0_i32_0 : i32, i32
  }
  func.func @transform_2(%arg0: i32) -> (i32, i32) {
    %c0_i32 = arith.constant 0 : i32
    %c0_i32_0 = arith.constant 0 : i32
    %c0_i32_1 = arith.constant 0 : i32
    return %c0_i32, %c0_i32_0 : i32, i32
  }
  func.func @transform_3(%arg0: i32) -> (i32, i32) {
    %c0_i32 = arith.constant 0 : i32
    %c0_i32_0 = arith.constant 0 : i32
    %c0_i32_1 = arith.constant 0 : i32
    return %c0_i32, %c0_i32_0 : i32, i32
  }
  func.func @transform_4(%arg0: i32) -> (i32, i32) {
    %c0_i32 = arith.constant 0 : i32
    %c0_i32_0 = arith.constant 0 : i32
    %c0_i32_1 = arith.constant 0 : i32
    return %c0_i32, %c0_i32_0 : i32, i32
  }
  func.func @transform_5(%arg0: i32) -> (i32, i32) {
    %c0_i32 = arith.constant 0 : i32
    %c0_i32_0 = arith.constant 0 : i32
    return %arg0, %c0_i32 : i32, i32
  }
}

</mosaic_0001>

<bundles_post_ra>
// kernel: tpu_custom_call.1
= control target key start
LH: loop header
LB: loop body
LE: loop exit
PB: predicated region body
PF: predicated region fallthrough
CT: control target
= control target key end

     0   :  { %10 = vsyncpa [#allocation3], 0  ;;  %s880_s0 = inlined_call_operand.hbm [shape: f32[16,128], index: 0, kind: input, shape index: {}]   ;;  %s881_s1 = inlined_call_operand.hbm [shape: f32[128,512], index: 1, kind: input, shape index: {}]   ;;  %s882_s2 = inlined_call_operand.hbm [shape: f32[1,512], index: 2, kind: input, shape index: {}]   ;;  %s883_s3 = inlined_call_operand.hbm [shape: f32[512,128], index: 3, kind: input, shape index: {}]   ;;  %s884_s4 = inlined_call_operand.vmem [shape: f32[1,128], index: 4, kind: input, shape index: {}]   ;;  %s885_s5 = inlined_call_operand.hbm [shape: f32[16,128], index: 5, kind: output, shape index: {}]  }
   0x1   :  { %11 = vsyncpa [#allocation6], 0 }
   0x2   :  { %12 = vsyncpa [#allocation9], 0 }
   0x3   :  { %13 = vsyncpa [#allocation4], 0  ;;  %s809_s18 = smov [#allocation5]  }
   0x4   :  { %s31_s19 = sshll.u32 %s809_s18, 4  ;;  %s32_s19 = int_to_ptr.vmem [resolvable:$true] %s31_s19 }
   0x5   :  { %s709_s20 = scalar_lea.vmem %s32_s19, 8192  ;;  %p714_p1 = scmp.lt.s32.totalorder %s32_s19, %s32_s19 }
   0x6   :  { %p710_p0 = scmp.ne.s32.totalorder %s32_s19, %s709_s20  ;;  %p715_p2 = scmp.lt.s32.totalorder %s709_s20, %s709_s20 }
   0x8   :  { %p716_p3 = por %p715_p2, %p714_p1 }
   0xa   :  { %p717_p4 = pnand %p716_p3, %p710_p0 }
   0xc   :  { %720 = shalt.err (!%p717_p4)
}
   0xd   :  { %s810_s21 = smov 512   ;;  %s811_s22 = smov 32  }
   0xe   :  { %37 = dma.hbm_to_vmem [thread:$0]  %s881_s1, 8192, %s32_s19, [#allocation6], %s810_s21, %s810_s21, %s811_s22  }
   0xf   :  { %s812_s25 = smov [#allocation2]  }
  0x10   :  { %s19_s26 = sshll.u32 %s812_s25, 4  ;;  %s20_s26 = int_to_ptr.vmem [resolvable:$true] %s19_s26 }
  0x11   :  { %s729_s27 = scalar_lea.vmem %s20_s26, 256  ;;  %p734_p6 = scmp.lt.s32.totalorder %s20_s26, %s20_s26 }
  0x12   :  { %p730_p5 = scmp.ne.s32.totalorder %s20_s26, %s729_s27  ;;  %p735_p7 = scmp.lt.s32.totalorder %s729_s27, %s729_s27 }
  0x14   :  { %p736_p8 = por %p735_p7, %p734_p6 }
  0x16   :  { %p737_p9 = pnand %p736_p8, %p730_p5 }
  0x18   :  { %740 = shalt.err (!%p737_p9)
}
  0x19   :  { %s813_s28 = smov 128   ;;  %s814_s29 = smov 8  }
  0x1a   :  { %25 = dma.hbm_to_vmem [thread:$0]  %s880_s0, 256, %s20_s26, [#allocation3], %s813_s28, %s813_s28, %s814_s29  }
  0x1b   :  { %s815_s1 = smov [#allocation7]   ;;  %s816_s8 = smov [#allocation8]  }
  0x1c   :  { %s44_s7 = sshll.u32 %s815_s1, 4  ;;  %s53_s9 = sshll.u32 %s816_s8, 4  ;;  %s45_s7 = int_to_ptr.vmem [resolvable:$true] %s44_s7  ;;  %s54_s9 = int_to_ptr.vmem [resolvable:$true] %s53_s9 }
  0x1d   :  { %s749_s10 = scalar_lea.vmem %s45_s7, 64  ;;  %p754_p11 = scmp.lt.s32.totalorder %s45_s7, %s45_s7 }
  0x1e   :  { %p750_p10 = scmp.ne.s32.totalorder %s45_s7, %s749_s10  ;;  %p755_p12 = scmp.lt.s32.totalorder %s749_s10, %s749_s10 }
  0x20   :  { %p756_p13 = por %p755_p12, %p754_p11 }
  0x22   :  { %p757_p0 = pnand %p756_p13, %p750_p10 }
  0x24   :  { %760 = shalt.err (!%p757_p0)
}
  0x25   :  { %47 = dma.hbm_to_vmem [thread:$0]  %s882_s2, 64, %s45_s7, [#allocation6]  }
  0x26   :  { %s769_s13 = scalar_lea.vmem %s54_s9, 8192  ;;  %p774_p2 = scmp.lt.s32.totalorder %s54_s9, %s54_s9 }
  0x27   :  { %p770_p1 = scmp.ne.s32.totalorder %s54_s9, %s769_s13  ;;  %p775_p3 = scmp.lt.s32.totalorder %s769_s13, %s769_s13 }
  0x29   :  { %p776_p4 = por %p775_p3, %p774_p2 }
  0x2b   :  { %p777_p5 = pnand %p776_p4, %p770_p1 }
  0x2d   :  { %780 = shalt.err (!%p777_p5)
}
  0x2e   :  { %59 = dma.hbm_to_vmem [thread:$0]  %s883_s3, 8192, %s54_s9, [#allocation9], %s813_s28, %s813_s28, %s814_s29  }
  0x2f   :  { %801 = dma.done.wait [#allocation3], 256  }
  0x30   :  { %802 = vsyncadd [#allocation3], 4294967040 }
  0x31   :  { %803 = dma.done.wait [#allocation6], 8256  }
  0x32   :  { %804 = vsyncadd [#allocation6], 4294959040 }
  0x33   :  { %805 = dma.done.wait [#allocation9], 8192  }
  0x34   :  { %806 = vsyncadd [#allocation9], 4294959104  ;;  %v817_v0 = vmov 0.0   ;;  %v137_v1 = vld [vmem:[#allocation5 + $0x1e8] sm:$0xff]  ;;  %v139_v2 = vld [vmem:[#allocation5 + $0x1f8] sm:$0xff]  ;;  %s818_s15 = smov [#allocation10]  }
  0x35   :  { %226 = vmatprep.mubr.f32.mxu0 %v817_v0  ;;  %303 = vmatprep.mubr.f32.mxu1 %v817_v0  ;;  %v136_v3 = vld [vmem:[#allocation5 + $0x1e0] sm:$0xff]  ;;  %v138_v4 = vld [vmem:[#allocation5 + $0x1f0] sm:$0xff]  ;;  %v133_v5 = vld [vmem:[#allocation5 + $0x1c8] sm:$0xff]  ;;  %s584_s16 = sshll.u32 %s818_s15, 4  ;;  %s585_s16 = int_to_ptr.vmem [resolvable:$true] %s584_s16 }
  0x36   :  { %162 = vmatprep.subr.mxu0 %v137_v1  ;;  %239 = vmatprep.subr.mxu1 %v139_v2  ;;  %v135_v6 = vld [vmem:[#allocation5 + $0x1d8] sm:$0xff]  ;;  %v132_v7 = vld [vmem:[#allocation5 + $0x1c0] sm:$0xff]  ;;  %v134_v8 = vld [vmem:[#allocation5 + $0x1d0] sm:$0xff]  ;;  %p786_p7 = scmp.lt.s32.totalorder %s585_s16, %s585_s16 }
  0x37   :  { %163 = vmatpush1.msra.mxu0 %v136_v3  ;;  %240 = vmatpush1.msra.mxu1 %v138_v4  ;;  %v129_v9 = vld [vmem:[#allocation5 + $0x1a8] sm:$0xff]  ;;  %v131_v10 = vld [vmem:[#allocation5 + $0x1b8] sm:$0xff]  ;;  %v128_v11 = vld [vmem:[#allocation5 + $0x1a0] sm:$0xff] }
  0x38   :  { %164 = vmatprep.subr.mxu0 %v133_v5  ;;  %241 = vmatprep.subr.mxu1 %v135_v6  ;;  %v130_v12 = vld [vmem:[#allocation5 + $0x1b0] sm:$0xff]  ;;  %v125_v13 = vld [vmem:[#allocation5 + $0x188] sm:$0xff]  ;;  %v127_v14 = vld [vmem:[#allocation5 + $0x198] sm:$0xff] }
  0x39   :  { %165 = vmatpush1.msra.mxu0 %v132_v7  ;;  %242 = vmatpush1.msra.mxu1 %v134_v8  ;;  %v124_v15 = vld [vmem:[#allocation5 + $0x180] sm:$0xff]  ;;  %v126_v16 = vld [vmem:[#allocation5 + $0x190] sm:$0xff]  ;;  %v121_v17 = vld [vmem:[#allocation5 + $0x168] sm:$0xff] }
  0x3a   :  { %166 = vmatprep.subr.mxu0 %v129_v9  ;;  %243 = vmatprep.subr.mxu1 %v131_v10  ;;  %v123_v18 = vld [vmem:[#allocation5 + $0x178] sm:$0xff]  ;;  %v120_v19 = vld [vmem:[#allocation5 + $0x160] sm:$0xff]  ;;  %v122_v20 = vld [vmem:[#allocation5 + $0x170] sm:$0xff] }
  0x3b   :  { %167 = vmatpush1.msra.mxu0 %v128_v11  ;;  %244 = vmatpush1.msra.mxu1 %v130_v12  ;;  %v117_v21 = vld [vmem:[#allocation5 + $0x148] sm:$0xff]  ;;  %v119_v22 = vld [vmem:[#allocation5 + $0x158] sm:$0xff]  ;;  %v116_v23 = vld [vmem:[#allocation5 + $0x140] sm:$0xff] }
  0x3c   :  { %168 = vmatprep.subr.mxu0 %v125_v13  ;;  %245 = vmatprep.subr.mxu1 %v127_v14  ;;  %v118_v24 = vld [vmem:[#allocation5 + $0x150] sm:$0xff]  ;;  %v113_v25 = vld [vmem:[#allocation5 + $0x128] sm:$0xff]  ;;  %v115_v26 = vld [vmem:[#allocation5 + $0x138] sm:$0xff] }
  0x3d   :  { %169 = vmatpush1.msra.mxu0 %v124_v15  ;;  %246 = vmatpush1.msra.mxu1 %v126_v16  ;;  %v112_v27 = vld [vmem:[#allocation5 + $0x120] sm:$0xff]  ;;  %v114_v28 = vld [vmem:[#allocation5 + $0x130] sm:$0xff]  ;;  %v109_v29 = vld [vmem:[#allocation5 + $0x108] sm:$0xff] }
  0x3e   :  { %170 = vmatprep.subr.mxu0 %v121_v17  ;;  %247 = vmatprep.subr.mxu1 %v123_v18  ;;  %v111_v30 = vld [vmem:[#allocation5 + $0x118] sm:$0xff]  ;;  %v108_v31 = vld [vmem:[#allocation5 + $0x100] sm:$0xff]  ;;  %v110_v32 = vld [vmem:[#allocation5 + $0x110] sm:$0xff] }
  0x3f   :  { %171 = vmatpush1.msra.mxu0 %v120_v19  ;;  %248 = vmatpush1.msra.mxu1 %v122_v20  ;;  %v105_v33 = vld [vmem:[#allocation5 + $0xe8] sm:$0xff]  ;;  %v107_v34 = vld [vmem:[#allocation5 + $0xf8] sm:$0xff]  ;;  %v104_v35 = vld [vmem:[#allocation5 + $0xe0] sm:$0xff] }
  0x40   :  { %172 = vmatprep.subr.mxu0 %v117_v21  ;;  %249 = vmatprep.subr.mxu1 %v119_v22  ;;  %v106_v36 = vld [vmem:[#allocation5 + $0xf0] sm:$0xff]  ;;  %v101_v37 = vld [vmem:[#allocation5 + $0xc8] sm:$0xff]  ;;  %v103_v38 = vld [vmem:[#allocation5 + $0xd8] sm:$0xff] }
  0x41   :  { %173 = vmatpush1.msra.mxu0 %v116_v23  ;;  %250 = vmatpush1.msra.mxu1 %v118_v24  ;;  %v100_v39 = vld [vmem:[#allocation5 + $0xc0] sm:$0xff]  ;;  %v102_v40 = vld [vmem:[#allocation5 + $0xd0] sm:$0xff]  ;;  %v97_v41 = vld [vmem:[#allocation5 + $0xa8] sm:$0xff] }
  0x42   :  { %174 = vmatprep.subr.mxu0 %v113_v25  ;;  %251 = vmatprep.subr.mxu1 %v115_v26  ;;  %v99_v42 = vld [vmem:[#allocation5 + $0xb8] sm:$0xff]  ;;  %v96_v43 = vld [vmem:[#allocation5 + $0xa0] sm:$0xff]  ;;  %v98_v44 = vld [vmem:[#allocation5 + $0xb0] sm:$0xff] }
  0x43   :  { %175 = vmatpush1.msra.mxu0 %v112_v27  ;;  %252 = vmatpush1.msra.mxu1 %v114_v28  ;;  %v93_v45 = vld [vmem:[#allocation5 + $0x88] sm:$0xff]  ;;  %v95_v46 = vld [vmem:[#allocation5 + $0x98] sm:$0xff]  ;;  %v92_v47 = vld [vmem:[#allocation5 + $0x80] sm:$0xff] }
  0x44   :  { %176 = vmatprep.subr.mxu0 %v109_v29  ;;  %253 = vmatprep.subr.mxu1 %v111_v30  ;;  %v94_v48 = vld [vmem:[#allocation5 + $0x90] sm:$0xff]  ;;  %v89_v49 = vld [vmem:[#allocation5 + $0x68] sm:$0xff]  ;;  %v91_v50 = vld [vmem:[#allocation5 + $0x78] sm:$0xff] }
  0x45   :  { %177 = vmatpush1.msra.mxu0 %v108_v31  ;;  %254 = vmatpush1.msra.mxu1 %v110_v32  ;;  %v88_v51 = vld [vmem:[#allocation5 + $0x60] sm:$0xff]  ;;  %v90_v52 = vld [vmem:[#allocation5 + $0x70] sm:$0xff]  ;;  %v85_v53 = vld [vmem:[#allocation5 + $0x48] sm:$0xff] }
  0x46   :  { %178 = vmatprep.subr.mxu0 %v105_v33  ;;  %255 = vmatprep.subr.mxu1 %v107_v34  ;;  %v87_v54 = vld [vmem:[#allocation5 + $0x58] sm:$0xff]  ;;  %v84_v55 = vld [vmem:[#allocation5 + $0x40] sm:$0xff]  ;;  %v86_v56 = vld [vmem:[#allocation5 + $0x50] sm:$0xff] }
  0x47   :  { %179 = vmatpush1.msra.mxu0 %v104_v35  ;;  %256 = vmatpush1.msra.mxu1 %v106_v36  ;;  %v81_v57 = vld [vmem:[#allocation5 + $0x28] sm:$0xff]  ;;  %v83_v58 = vld [vmem:[#allocation5 + $0x38] sm:$0xff]  ;;  %v80_v59 = vld [vmem:[#allocation5 + $0x20] sm:$0xff] }
  0x48   :  { %180 = vmatprep.subr.mxu0 %v101_v37  ;;  %257 = vmatprep.subr.mxu1 %v103_v38  ;;  %v82_v60 = vld [vmem:[#allocation5 + $0x30] sm:$0xff]  ;;  %v77_v61 = vld [vmem:[#allocation5 + $0x8] sm:$0xff]  ;;  %v79_v62 = vld [vmem:[#allocation5 + $0x18] sm:$0xff] }
  0x49   :  { %181 = vmatpush1.msra.mxu0 %v100_v39  ;;  %258 = vmatpush1.msra.mxu1 %v102_v40  ;;  %v76_v63 = vld [vmem:[#allocation5] sm:$0xff]  ;;  %v78_v1 = vld [vmem:[#allocation5 + $0x10] sm:$0xff]  ;;  %v75_v7 = vld [vmem:[#allocation2 + $0x8] sm:$0xff] }
  0x4a   :  { %182 = vmatprep.subr.mxu0 %v97_v41  ;;  %259 = vmatprep.subr.mxu1 %v99_v42  ;;  %v74_v2 = vld [vmem:[#allocation2] sm:$0xff]  ;;  %v387_v3 = vld [vmem:[#allocation8 + $0xf8] sm:$0xff]  ;;  %v416_v16 = vld [vmem:[#allocation8 + $0x1e0] sm:$0xff] }
  0x4b   :  { %183 = vmatpush1.msra.mxu0 %v96_v43  ;;  %260 = vmatpush1.msra.mxu1 %v98_v44  ;;  %v419_v4 = vld [vmem:[#allocation8 + $0x1f8] sm:$0xff]  ;;  %v386_v8 = vld [vmem:[#allocation8 + $0xf0] sm:$0xff]  ;;  %v385_v12 = vld [vmem:[#allocation8 + $0xe8] sm:$0xff] }
  0x4c   :  { %184 = vmatprep.subr.mxu0 %v93_v45  ;;  %261 = vmatprep.subr.mxu1 %v95_v46  ;;  %v371_v5 = vld [vmem:[#allocation8 + $0x78] sm:$0xff]  ;;  %v418_v9 = vld [vmem:[#allocation8 + $0x1f0] sm:$0xff]  ;;  %v417_v13 = vld [vmem:[#allocation8 + $0x1e8] sm:$0xff] }
  0x4d   :  { %185 = vmatpush1.msra.mxu0 %v92_v47  ;;  %262 = vmatpush1.msra.mxu1 %v94_v48  ;;  %v403_v6 = vld [vmem:[#allocation8 + $0x178] sm:$0xff]  ;;  %v370_v10 = vld [vmem:[#allocation8 + $0x70] sm:$0xff]  ;;  %v369_v14 = vld [vmem:[#allocation8 + $0x68] sm:$0xff] }
  0x4e   :  { %186 = vmatprep.subr.mxu0 %v89_v49  ;;  %263 = vmatprep.subr.mxu1 %v91_v50  ;;  %v402_v11 = vld [vmem:[#allocation8 + $0x170] sm:$0xff]  ;;  %v401_v15 = vld [vmem:[#allocation8 + $0x168] sm:$0xff]  ;;  %v368_v17 = vld [vmem:[#allocation8 + $0x60] sm:$0xff] }
  0x4f   :  { %187 = vmatpush1.msra.mxu0 %v88_v51  ;;  %264 = vmatpush1.msra.mxu1 %v90_v52  ;;  %v400_v18 = vld [vmem:[#allocation8 + $0x160] sm:$0xff]  ;;  %v383_v19 = vld [vmem:[#allocation8 + $0xd8] sm:$0xff]  ;;  %v382_v23 = vld [vmem:[#allocation8 + $0xd0] sm:$0xff] }
  0x50   :  { %188 = vmatprep.subr.mxu0 %v85_v53  ;;  %265 = vmatprep.subr.mxu1 %v87_v54  ;;  %v415_v20 = vld [vmem:[#allocation8 + $0x1d8] sm:$0xff]  ;;  %v414_v24 = vld [vmem:[#allocation8 + $0x1d0] sm:$0xff]  ;;  %v381_v27 = vld [vmem:[#allocation8 + $0xc8] sm:$0xff] }
  0x51   :  { %189 = vmatpush1.msra.mxu0 %v84_v55  ;;  %266 = vmatpush1.msra.mxu1 %v86_v56  ;;  %v367_v21 = vld [vmem:[#allocation8 + $0x58] sm:$0xff]  ;;  %v366_v25 = vld [vmem:[#allocation8 + $0x50] sm:$0xff]  ;;  %v413_v28 = vld [vmem:[#allocation8 + $0x1c8] sm:$0xff] }
  0x52   :  { %190 = vmatprep.subr.mxu0 %v81_v57  ;;  %267 = vmatprep.subr.mxu1 %v83_v58  ;;  %v399_v22 = vld [vmem:[#allocation8 + $0x158] sm:$0xff]  ;;  %v398_v26 = vld [vmem:[#allocation8 + $0x150] sm:$0xff]  ;;  %v365_v29 = vld [vmem:[#allocation8 + $0x48] sm:$0xff] }
  0x53   :  { %191 = vmatpush1.msra.mxu0 %v80_v59  ;;  %268 = vmatpush1.msra.mxu1 %v82_v60  ;;  %v397_v30 = vld [vmem:[#allocation8 + $0x148] sm:$0xff]  ;;  %v380_v31 = vld [vmem:[#allocation8 + $0xc0] sm:$0xff]  ;;  %v379_v35 = vld [vmem:[#allocation8 + $0xb8] sm:$0xff] }
  0x54   :  { %192 = vmatprep.subr.mxu0 %v77_v61  ;;  %269 = vmatprep.subr.mxu1 %v79_v62  ;;  %v412_v32 = vld [vmem:[#allocation8 + $0x1c0] sm:$0xff]  ;;  %v411_v36 = vld [vmem:[#allocation8 + $0x1b8] sm:$0xff]  ;;  %v378_v39 = vld [vmem:[#allocation8 + $0xb0] sm:$0xff] }
  0x55   :  { %193 = vmatpush1.msra.mxu0 %v76_v63  ;;  %270 = vmatpush1.msra.mxu1 %v78_v1  ;;  %v364_v33 = vld [vmem:[#allocation8 + $0x40] sm:$0xff]  ;;  %v363_v37 = vld [vmem:[#allocation8 + $0x38] sm:$0xff]  ;;  %v410_v40 = vld [vmem:[#allocation8 + $0x1b0] sm:$0xff] }
  0x56   :  { %227 = vmatmul.mubr.f32.vlgmr.msra.gmra.mxu0 %v74_v2  ;;  %304 = vmatmul.mubr.f32.vlgmr.msra.gmra.mxu1 %v74_v2  ;;  %v396_v34 = vld [vmem:[#allocation8 + $0x140] sm:$0xff]  ;;  %v395_v38 = vld [vmem:[#allocation8 + $0x138] sm:$0xff]  ;;  %v362_v41 = vld [vmem:[#allocation8 + $0x30] sm:$0xff] }
  0x57   :  { %232 = vmatprep.mubr.f32.mxu0 %v817_v0  ;;  %309 = vmatprep.mubr.f32.mxu1 %v817_v0  ;;  %v384_v0 = vld [vmem:[#allocation8 + $0xe0] sm:$0xff]  ;;  %v394_v42 = vld [vmem:[#allocation8 + $0x130] sm:$0xff]  ;;  %v377_v43 = vld [vmem:[#allocation8 + $0xa8] sm:$0xff] }
  0x58   :  { %599 = vmatprep.subr.mxu0 %v387_v3  ;;  %637 = vmatprep.subr.mxu1 %v419_v4  ;;  %v409_v44 = vld [vmem:[#allocation8 + $0x1a8] sm:$0xff]  ;;  %v376_v47 = vld [vmem:[#allocation8 + $0xa0] sm:$0xff]  ;;  %v375_v51 = vld [vmem:[#allocation8 + $0x98] sm:$0xff]  ;;  %v142_v4 = vlaneseq }
  0x59   :  { %600 = vmatpush3.msra.mxu0 %v371_v5  ;;  %638 = vmatpush3.msra.mxu1 %v403_v6  ;;  %v361_v45 = vld [vmem:[#allocation8 + $0x28] sm:$0xff]  ;;  %v408_v48 = vld [vmem:[#allocation8 + $0x1a0] sm:$0xff]  ;;  %v407_v52 = vld [vmem:[#allocation8 + $0x198] sm:$0xff] }
  0x5a   :  { %233 = vmatmul.mubr.f32.gmra.mxu0 %v75_v7  ;;  %310 = vmatmul.mubr.f32.gmra.mxu1 %v75_v7  ;;  %v393_v46 = vld [vmem:[#allocation8 + $0x128] sm:$0xff]  ;;  %v360_v49 = vld [vmem:[#allocation8 + $0x20] sm:$0xff]  ;;  %v359_v53 = vld [vmem:[#allocation8 + $0x18] sm:$0xff]  ;;  %v143_v5 = vshrl.u32 %v142_v4, 7 }
  0x5b   :  { %601 = vmatprep.subr.mxu0 %v386_v8  ;;  %639 = vmatprep.subr.mxu1 %v418_v9  ;;  %v392_v50 = vld [vmem:[#allocation8 + $0x120] sm:$0xff]  ;;  %v391_v54 = vld [vmem:[#allocation8 + $0x118] sm:$0xff]  ;;  %v374_v55 = vld [vmem:[#allocation8 + $0x90] sm:$0xff] }
  0x5c   :  { %602 = vmatpush3.msra.mxu0 %v370_v10  ;;  %640 = vmatpush3.msra.mxu1 %v402_v11  ;;  %v406_v56 = vld [vmem:[#allocation8 + $0x190] sm:$0xff]  ;;  %v373_v59 = vld [vmem:[#allocation8 + $0x88] sm:$0xff]  ;;  %v372_v63 = vld [vmem:[#allocation8 + $0x80] sm:$0xff]  ;;  %v144_v6 = vsub.s32 0, %v143_v5  ;;  %v152_v7 = vsub.s32 2, %v143_v5  ;;  %v148_v9 = vsub.s32 1, %v143_v5 }
  0x5d   :  { %603 = vmatprep.subr.mxu0 %v385_v12  ;;  %641 = vmatprep.subr.mxu1 %v417_v13  ;;  %v358_v57 = vld [vmem:[#allocation8 + $0x10] sm:$0xff]  ;;  %v405_v60 = vld [vmem:[#allocation8 + $0x188] sm:$0xff]  ;;  %v404_v1 = vld [vmem:[#allocation8 + $0x180] sm:$0xff]  ;;  %v156_v10 = vsub.s32 3, %v143_v5 }
  0x5e   :  { %604 = vmatpush3.msra.mxu0 %v369_v14  ;;  %642 = vmatpush3.msra.mxu1 %v401_v15  ;;  %v390_v58 = vld [vmem:[#allocation8 + $0x110] sm:$0xff]  ;;  %v357_v61 = vld [vmem:[#allocation8 + $0x8] sm:$0xff]  ;;  %v356_v2 = vld [vmem:[#allocation8] sm:$0xff] }
  0x5f   :  { %605 = vmatprep.subr.mxu0 %v384_v0  ;;  %643 = vmatprep.subr.mxu1 %v416_v16  ;;  %v389_v62 = vld [vmem:[#allocation8 + $0x108] sm:$0xff]  ;;  %v388_v3 = vld [vmem:[#allocation8 + $0x100] sm:$0xff]  ;;  %v140_v8 = vld [vmem:[#allocation7] sm:$0xf] }
  0x60   :  { %606 = vmatpush3.msra.mxu0 %v368_v17  ;;  %644 = vmatpush3.msra.mxu1 %v400_v18  ;;  %v145_v11 = vrot.slane %v140_v8, %v144_v6  ;;  %v153_v12 = vrot.slane %v140_v8, %v152_v7  ;;  %v149_v15 = vrot.slane %v140_v8, %v148_v9  ;;  %v598_v9 = vld [vmem:[%s884_s4] ss:$0 sm:$0xff]  ;;  %s781_s4 = scalar_lea.vmem %s585_s16, 256 }
  0x61   :  { %607 = vmatprep.subr.mxu0 %v383_v19  ;;  %645 = vmatprep.subr.mxu1 %v415_v20  ;;  %v157_v0 = vrot.slane %v140_v8, %v156_v10  ;;  %p782_p6 = scmp.ne.s32.totalorder %s585_s16, %s781_s4  ;;  %p787_p8 = scmp.lt.s32.totalorder %s781_s4, %s781_s4 }
  0x62   :  { %608 = vmatpush3.msra.mxu0 %v367_v21  ;;  %646 = vmatpush3.msra.mxu1 %v399_v22 }
  0x63   :  { %609 = vmatprep.subr.mxu0 %v382_v23  ;;  %647 = vmatprep.subr.mxu1 %v414_v24  ;;  %p788_p9 = por %p787_p8, %p786_p7 }
  0x64   :  { %610 = vmatpush3.msra.mxu0 %v366_v25  ;;  %648 = vmatpush3.msra.mxu1 %v398_v26 }
  0x65   :  { %611 = vmatprep.subr.mxu0 %v381_v27  ;;  %649 = vmatprep.subr.mxu1 %v413_v28  ;;  %p789_p10 = pnand %p788_p9, %p782_p6 }
  0x66   :  { %612 = vmatpush3.msra.mxu0 %v365_v29  ;;  %650 = vmatpush3.msra.mxu1 %v397_v30 }
  0x67   :  { %613 = vmatprep.subr.mxu0 %v380_v31  ;;  %651 = vmatprep.subr.mxu1 %v412_v32 }
  0x68   :  { %614 = vmatpush3.msra.mxu0 %v364_v33  ;;  %652 = vmatpush3.msra.mxu1 %v396_v34 }
  0x69   :  { %615 = vmatprep.subr.mxu0 %v379_v35  ;;  %653 = vmatprep.subr.mxu1 %v411_v36 }
  0x6a   :  { %616 = vmatpush3.msra.mxu0 %v363_v37  ;;  %654 = vmatpush3.msra.mxu1 %v395_v38 }
  0x6b   :  { %617 = vmatprep.subr.mxu0 %v378_v39  ;;  %655 = vmatprep.subr.mxu1 %v410_v40 }
  0x6c   :  { %618 = vmatpush3.msra.mxu0 %v362_v41  ;;  %656 = vmatpush3.msra.mxu1 %v394_v42 }
  0x6d   :  { %619 = vmatprep.subr.mxu0 %v377_v43  ;;  %657 = vmatprep.subr.mxu1 %v409_v44 }
  0x6e   :  { %620 = vmatpush3.msra.mxu0 %v361_v45  ;;  %658 = vmatpush3.msra.mxu1 %v393_v46 }
  0x6f   :  { %621 = vmatprep.subr.mxu0 %v376_v47  ;;  %659 = vmatprep.subr.mxu1 %v408_v48 }
  0x70   :  { %622 = vmatpush3.msra.mxu0 %v360_v49  ;;  %660 = vmatpush3.msra.mxu1 %v392_v50 }
  0x71   :  { %623 = vmatprep.subr.mxu0 %v375_v51  ;;  %661 = vmatprep.subr.mxu1 %v407_v52 }
  0x72   :  { %624 = vmatpush3.msra.mxu0 %v359_v53  ;;  %662 = vmatpush3.msra.mxu1 %v391_v54 }
  0x73   :  { %625 = vmatprep.subr.mxu0 %v374_v55  ;;  %663 = vmatprep.subr.mxu1 %v406_v56 }
  0x74   :  { %626 = vmatpush3.msra.mxu0 %v358_v57  ;;  %664 = vmatpush3.msra.mxu1 %v390_v58 }
  0x75   :  { %627 = vmatprep.subr.mxu0 %v373_v59  ;;  %665 = vmatprep.subr.mxu1 %v405_v60 }
  0x76   :  { %628 = vmatpush3.msra.mxu0 %v357_v61  ;;  %666 = vmatpush3.msra.mxu1 %v389_v62 }
  0x77   :  { %629 = vmatprep.subr.mxu0 %v372_v63  ;;  %667 = vmatprep.subr.mxu1 %v404_v1 }
  0x78   :  { %630 = vmatpush3.msra.mxu0 %v356_v2  ;;  %668 = vmatpush3.msra.mxu1 %v388_v3 }
 0x116   :  { %v228_v13 = vpop.f32.mrf.mxu0  ;;  %v305_v14 = vpop.f32.mrf.mxu1 }
 0x117   :  { %v229_v16 = vadd.f32 %v228_v13, %v145_v11  ;;  %v306_v17 = vadd.f32 %v305_v14, %v153_v12 }
 0x118   :  { %v230_v18 = vpop.f32.mrf.mxu0  ;;  %v307_v19 = vpop.f32.mrf.mxu1 }
 0x119   :  { %v324_v20 = vmul.f32 0.70710677, %v229_v16  ;;  %v326_v21 = vmul.f32 0.70710677, %v306_v17  ;;  %v231_v22 = vadd.f32 %v230_v18, %v149_v15  ;;  %v308_v23 = vadd.f32 %v307_v19, %v157_v0 }
 0x11a   :  { %v234_v24 = vpop.f32.mrf.mxu0  ;;  %v311_v25 = vpop.f32.mrf.mxu1  ;;  %v316_v47 = vmul.f32 0.5, %v229_v16  ;;  %v318_v51 = vmul.f32 0.5, %v306_v17 }
 0x11b   :  { %685 = verf.f32 %v324_v20  ;;  %v235_v26 = vadd.f32 %v234_v24, %v145_v11  ;;  %v312_v27 = vadd.f32 %v311_v25, %v153_v12  ;;  %v325_v28 = vmul.f32 0.70710677, %v231_v22 }
 0x11c   :  { %687 = verf.f32 %v326_v21  ;;  %v236_v29 = vpop.f32.mrf.mxu0  ;;  %v313_v30 = vpop.f32.mrf.mxu1  ;;  %v327_v31 = vmul.f32 0.70710677, %v308_v23  ;;  %v317_v44 = vmul.f32 0.5, %v231_v22  ;;  %v319_v48 = vmul.f32 0.5, %v308_v23 }
 0x11d   :  { %v328_v32 = vmul.f32 0.70710677, %v235_v26  ;;  %689 = verf.f32 %v325_v28  ;;  %v330_v33 = vmul.f32 0.70710677, %v312_v27  ;;  %v237_v34 = vadd.f32 %v236_v29, %v149_v15 }
 0x11e   :  { %v314_v35 = vadd.f32 %v313_v30, %v157_v0  ;;  %691 = verf.f32 %v327_v31  ;;  %v320_v62 = vmul.f32 0.5, %v235_v26  ;;  %v322_v2 = vmul.f32 0.5, %v312_v27 }
 0x11f   :  { %693 = verf.f32 %v328_v32  ;;  %v329_v36 = vmul.f32 0.70710677, %v237_v34  ;;  %v321_v59 = vmul.f32 0.5, %v237_v34 }
 0x120   :  { %695 = verf.f32 %v330_v33  ;;  %v331_v37 = vmul.f32 0.70710677, %v314_v35  ;;  %v323_v63 = vmul.f32 0.5, %v314_v35 }
 0x121   :  { %697 = verf.f32 %v329_v36 }
 0x122   :  { %699 = verf.f32 %v331_v37 }
 0x128   :  { %v686_v38 = vpop.eup %685 }
 0x129   :  { %v688_v39 = vpop.eup %687  ;;  %v340_v41 = vadd.f32 1.0, %v686_v38 }
 0x12a   :  { %v690_v40 = vpop.eup %689  ;;  %v342_v43 = vadd.f32 1.0, %v688_v39 }
 0x12b   :  { %v692_v42 = vpop.eup %691  ;;  %v341_v45 = vadd.f32 1.0, %v690_v40  ;;  %v348_v54 = vmul.f32 %v340_v41, %v316_v47 }
 0x12c   :  { %v694_v46 = vpop.eup %693  ;;  %v343_v49 = vadd.f32 1.0, %v692_v42  ;;  %v350_v58 = vmul.f32 %v342_v43, %v318_v51 }
 0x12d   :  { %v696_v50 = vpop.eup %695  ;;  %v349_v52 = vmul.f32 %v341_v45, %v317_v44  ;;  %v344_v56 = vadd.f32 1.0, %v694_v46 }
 0x12e   :  { %v698_v53 = vpop.eup %697  ;;  %v351_v55 = vmul.f32 %v343_v49, %v319_v48  ;;  %v346_v61 = vadd.f32 1.0, %v696_v50 }
 0x12f   :  { %v700_v57 = vpop.eup %699  ;;  %491 = vmatprep.mubr.f32.mxu0 %v349_v52  ;;  %v345_v60 = vadd.f32 1.0, %v698_v53  ;;  %v352_v5 = vmul.f32 %v344_v56, %v320_v62 }
 0x130   :  { %566 = vmatprep.mubr.f32.mxu1 %v351_v55  ;;  %492 = vmatmul.mubr.f32.vlgmr.msra.gmra.mxu0 %v348_v54  ;;  %v347_v1 = vadd.f32 1.0, %v700_v57  ;;  %v354_v6 = vmul.f32 %v346_v61, %v322_v2 }
 0x131   :  { %567 = vmatmul.mubr.f32.vlgmr.msra.gmra.mxu1 %v350_v58  ;;  %v353_v3 = vmul.f32 %v345_v60, %v321_v59 }
 0x132   :  { %v355_v4 = vmul.f32 %v347_v1, %v323_v63 }
 0x133   :  { %496 = vmatprep.mubr.f32.mxu0 %v353_v3 }
 0x134   :  { %571 = vmatprep.mubr.f32.mxu1 %v355_v4  ;;  %497 = vmatmul.mubr.f32.gmra.mxu0 %v352_v5 }
 0x135   :  { %572 = vmatmul.mubr.f32.gmra.mxu1 %v354_v6 }
 0x1f0   :  { %v631_v7 = vpop.f32.mrf.mxu0 }
 0x1f1   :  { %v669_v8 = vpop.f32.mrf.mxu1 }
 0x1f2   :  { %v632_v10 = vpop.f32.mrf.mxu0 }
 0x1f3   :  { %v633_v11 = vadd.f32 %v632_v10, %v631_v7  ;;  %v670_v12 = vpop.f32.mrf.mxu1 }
 0x1f4   :  { %v634_v13 = vpop.f32.mrf.mxu0  ;;  %v671_v15 = vadd.f32 %v670_v12, %v669_v8 }
 0x1f5   :  { %v494_v14 = vadd.f32 %v633_v11, %v598_v9  ;;  %v672_v0 = vpop.f32.mrf.mxu1 }
 0x1f6   :  { %v635_v16 = vpop.f32.mrf.mxu0 }
 0x1f7   :  { %v569_v17 = vadd.f32 %v671_v15, %v494_v14  ;;  %v636_v18 = vadd.f32 %v635_v16, %v634_v13  ;;  %v673_v19 = vpop.f32.mrf.mxu1 }
 0x1f8   :  { %v674_v21 = vadd.f32 %v673_v19, %v672_v0 }
 0x1f9   :  { %577 = vst [vmem:[#allocation10] sm:$0xff] %v569_v17  ;;  %v499_v20 = vadd.f32 %v636_v18, %v598_v9 }
 0x1fb   :  { %v574_v22 = vadd.f32 %v674_v21, %v499_v20 }
 0x1fd   :  { %578 = vst [vmem:[#allocation10 + $0x8] sm:$0xff] %v574_v22 }
 0x1fe   :  { %792 = shalt.err (!%p789_p10)
}
 0x1ff   :  { %590 = dma.vmem_to_hbm [thread:$0]  %s585_s16, 256, %s885_s5, [#allocation4], %s813_s28, %s813_s28, %s814_s29  }
 0x200   :  { %807 = dma.done.wait [#allocation4], 256  }
 0x201   :  { %808 = vsyncadd [#allocation4], 4294967040 }
 0x202   :  { %594 = vsyncpa [#allocation3], 1 }
 0x203   :  { %595 = vsyncpa [#allocation6], 1 }
 0x204   :  { %596 = vsyncpa [#allocation9], 1 }
 0x205   :  { %597 = vsyncpa [#allocation4], 1 }

</bundles_post_ra>
